<compile_context>
chip_gen: v5e
topology: v5e:2x2
jax: 0.10.0
libtpu: 0.0.40
codegen_flags: <defaults>
</compile_context>

<pallas_src>
import functools

import jax
import jax.numpy as jnp
from jax.experimental import pallas as pl
from jax.experimental.pallas import tpu as pltpu

LOG_STD_MIN = -5.0
LOG_STD_MAX = 2.0


def _round_up(n, m):
    return ((n + m - 1) // m) * m


def _lane_multiple():
    # v6e / v7x MXUs are 2x256^2: pad lane dims to 256 to fill each push.
    # v5e (4x128^2) and unknown targets stay at 128.
    try:
        kind = jax.devices()[0].device_kind.lower()
    except Exception:
        return 128
    return 256 if ("v6" in kind or "v7" in kind) else 128


def _policy_kernel(x_ref, w1_ref, b1_ref, w2_ref, b2_ref, w3_ref, b3_ref, out_ref):
    # Activations cast to bf16 for the MXU (no-op if state is already bf16);
    # accumulate in f32.
    x = x_ref[...].astype(jnp.bfloat16)

    h1 = jnp.dot(x, w1_ref[...], preferred_element_type=jnp.float32) + b1_ref[...]
    h1 = jnp.maximum(h1, 0.0).astype(jnp.bfloat16)

    h2 = jnp.dot(h1, w2_ref[...], preferred_element_type=jnp.float32) + b2_ref[...]
    h2 = jnp.maximum(h2, 0.0).astype(jnp.bfloat16)

    # Fused, lane-padded final layer: columns [0:Ap) = mu, [Ap:2Ap) = log_std.
    y = jnp.dot(h2, w3_ref[...], preferred_element_type=jnp.float32) + b3_ref[...]

    ap = y.shape[-1] // 2                      # static, multiple of 128
    mu = y[:, :ap]                             # lane-aligned slice
    ls = jnp.tanh(y[:, ap:])                   # tanh/exp only on the std half
    ls = LOG_STD_MIN + 0.5 * (LOG_STD_MAX - LOG_STD_MIN) * (ls + 1.0)
    std = jnp.exp(ls)

    out_ref[:, :ap] = mu.astype(out_ref.dtype)
    out_ref[:, ap:] = std.astype(out_ref.dtype)


@functools.partial(jax.jit, static_argnames=("num_actions",))
def policy_forward(state, params, num_actions):
    """Returns (mu, std) of the Normal distribution, like PolicyNetwork.forward."""
    w1, b1, w2, b2, w3, b3 = params
    B, I = state.shape
    Hp = w1.shape[1]          # lane-padded hidden size
    A2p = w3.shape[1]         # 2 * Ap (lane-padded)
    Ap = A2p // 2
    A = num_actions

    # Batch tiling: one step for small B (per-step overhead dominates);
    # >= 2 steps for larger B so v7x's second TensorCore gets work.
    if B <= 64:
        TB = max(8, _round_up(B, 8))
    else:
        cap = 256 if Hp >= 2048 else 512
        TB = min(cap, _round_up(pl.cdiv(B, 2), 8))
    Bp = _round_up(B, TB)
    if Bp != B:
        state = jnp.pad(state, ((0, Bp - B), (0, 0)))
    grid = (Bp // TB,)

    in_bytes = jnp.dtype(state.dtype).itemsize

    # VMEM budget: double-buffered activation/output blocks, single-buffered
    # bf16 weights (pl.Buffered(1)), f32 biases, plus f32 h1/h2 intermediates.
    vmem_need = (
        2 * TB * I * in_bytes
        + 2 * TB * A2p * 4
        + (I * Hp + Hp * Hp + Hp * A2p) * 2
        + (2 * Hp + A2p) * 4
        + 4 * TB * Hp * 4
    )
    vmem_limit = None
    if vmem_need > 32 * 1024 * 1024:
        vmem_limit = min(int(vmem_need * 5 // 4), 64 * 1024 * 1024)

    flops = 2 * Bp * (I * Hp + Hp * Hp + Hp * A2p)
    bytes_accessed = (
        Bp * I * in_bytes                                 # state
        + (I * Hp + Hp * Hp + Hp * A2p) * 2               # bf16 weights
        + (2 * Hp + A2p) * 4                              # f32 biases
        + Bp * A2p * 4                                    # output slab
    )
    cost = pl.CostEstimate(
        flops=flops,
        transcendentals=2 * Bp * Ap,                      # tanh + exp (std half)
        bytes_accessed=bytes_accessed,
    )

    def _resident(shape):
        # Constant-index (VMEM-resident) operand: no double buffering needed.
        return pl.BlockSpec(shape, lambda i: (0, 0), pipeline_mode=pl.Buffered(1))

    out = pl.pallas_call(
        _policy_kernel,
        out_shape=jax.ShapeDtypeStruct((Bp, A2p), jnp.float32),
        grid=grid,
        in_specs=[
            pl.BlockSpec((TB, I), lambda i: (i, 0)),      # activations: batch-tiled
            _resident((I, Hp)),
            _resident((1, Hp)),
            _resident((Hp, Hp)),
            _resident((1, Hp)),
            _resident((Hp, A2p)),
            _resident((1, A2p)),
        ],
        out_specs=pl.BlockSpec((TB, A2p), lambda i: (i, 0)),
        compiler_params=pltpu.CompilerParams(
            dimension_semantics=("parallel",),            # v7x: batch over 2 TCs
            vmem_limit_bytes=vmem_limit,
        ),
        cost_estimate=cost,
    )(state, w1, b1, w2, b2, w3, b3)

    mu = out[:B, :A]
    std = out[:B, Ap:Ap + A]
    return mu, std


def init_params(key, num_inputs, num_actions, hidden_size, lane_multiple=None):
    """Deterministic synthetic init with TPU-friendly zero padding.

    Stored layout (zero padding is numerically inert):
      W1: (I,  Hp)   bf16      b1: (1, Hp)    f32
      W2: (Hp, Hp)   bf16      b2: (1, Hp)    f32
      W3: (Hp, 2*Ap) bf16      b3: (1, 2*Ap)  f32
    Hp = round_up(H, L), Ap = round_up(A, L), L = 128 (256 on v6e/v7x).
    W3/b3 columns are laid out [mu (A) | 0 | log_std (A) | 0] so mu/log_std
    live in separate lane-aligned halves of the fused output slab.
    """
    if lane_multiple is None:
        lane_multiple = _lane_multiple()
    I, H, A = num_inputs, num_actions and num_inputs and hidden_size, num_actions
    I, H, A = num_inputs, hidden_size, num_actions
    Hp = _round_up(H, lane_multiple)
    Ap = _round_up(A, lane_multiple)

    ks = jax.random.split(key, 6)
    scale = 0.1
    w1 = scale * jax.random.normal(ks[0], (I, H), jnp.float32)
    b1 = scale * jax.random.normal(ks[1], (H,), jnp.float32)
    w2 = scale * jax.random.normal(ks[2], (H, H), jnp.float32)
    b2 = scale * jax.random.normal(ks[3], (H,), jnp.float32)
    w3 = scale * jax.random.normal(ks[4], (H, 2 * A), jnp.float32)
    b3 = scale * jax.random.normal(ks[5], (2 * A,), jnp.float32)

    w1p = jnp.zeros((I, Hp), jnp.float32).at[:, :H].set(w1)
    b1p = jnp.zeros((1, Hp), jnp.float32).at[0, :H].set(b1)
    w2p = jnp.zeros((Hp, Hp), jnp.float32).at[:H, :H].set(w2)
    b2p = jnp.zeros((1, Hp), jnp.float32).at[0, :H].set(b2)
    w3p = (jnp.zeros((Hp, 2 * Ap), jnp.float32)
           .at[:H, :A].set(w3[:, :A])
           .at[:H, Ap:Ap + A].set(w3[:, A:]))
    b3p = (jnp.zeros((1, 2 * Ap), jnp.float32)
           .at[0, :A].set(b3[:A])
           .at[0, Ap:Ap + A].set(b3[A:]))

    return (w1p.astype(jnp.bfloat16), b1p,
            w2p.astype(jnp.bfloat16), b2p,
            w3p.astype(jnp.bfloat16), b3p)


def _reference_bf16(state, params, num_actions):
    """Pure-JAX reference with the identical bf16 matmul / f32 accumulate recipe."""
    w1, b1, w2, b2, w3, b3 = params
    x = state.astype(jnp.bfloat16)
    h1 = jnp.maximum(jnp.dot(x, w1, preferred_element_type=jnp.float32) + b1, 0.0)
    h2 = jnp.maximum(
        jnp.dot(h1.astype(jnp.bfloat16), w2, preferred_element_type=jnp.float32) + b2, 0.0)
    y = jnp.dot(h2.astype(jnp.bfloat16), w3, preferred_element_type=jnp.float32) + b3
    Ap = y.shape[-1] // 2
    A = num_actions
    mu, ls = y[:, :A], y[:, Ap:Ap + A]
    ls = jnp.tanh(ls)
    ls = LOG_STD_MIN + 0.5 * (LOG_STD_MAX - LOG_STD_MIN) * (ls + 1.0)
    return mu, jnp.exp(ls)


def _reference_f32(state, params, num_actions):
    """Full-f32 reference == exact PyTorch forward semantics (on padded weights)."""
    w1, b1, w2, b2, w3, b3 = params
    w1, w2, w3 = (w.astype(jnp.float32) for w in (w1, w2, w3))
    h1 = jnp.maximum(state @ w1 + b1, 0.0)
    h2 = jnp.maximum(h1 @ w2 + b2, 0.0)
    y = h2 @ w3 + b3
    Ap = y.shape[-1] // 2
    A = num_actions
    mu, ls = y[:, :A], y[:, Ap:Ap + A]
    ls = jnp.tanh(ls)
    ls = LOG_STD_MIN + 0.5 * (LOG_STD_MAX - LOG_STD_MIN) * (ls + 1.0)
    return mu, jnp.exp(ls)


if __name__ == "__main__":
    num_inputs, num_actions, hidden_size = 32, 16, 32
    batch = 8

    key = jax.random.PRNGKey(0)
    k_state, k_params = jax.random.split(key)
    state = jax.random.normal(k_state, (batch, num_inputs), jnp.float32)
    params = init_params(k_params, num_inputs, num_actions, hidden_size)

    mu, std = policy_forward(state, params, num_actions)
    jax.block_until_ready((mu, std))

    assert mu.shape == (batch, num_actions) and std.shape == (batch, num_actions)
    assert bool(jnp.all(jnp.isfinite(mu))) and bool(jnp.all(std > 0))

    # Tight check against a reference using the identical bf16-matmul recipe.
    mu_b, std_b = _reference_bf16(state, params, num_actions)
    assert jnp.allclose(mu, mu_b, atol=1e-3, rtol=1e-3)
    assert jnp.allclose(std, std_b, atol=1e-3, rtol=1e-3)

    # Loose check against full-f32 PyTorch semantics (bf16 matmul precision).
    mu_f, std_f = _reference_f32(state, params, num_actions)
    assert jnp.allclose(mu, mu_f, atol=1e-1, rtol=1e-1)
    assert jnp.allclose(std, std_f, atol=1e-1, rtol=1e-1)

    # TODO(synk): Normal(mu, std) sampling / act()'s torch.sort top-k device
    # selection stay host-side (no Pallas equivalent needed for the forward).
    print("KERNEL_OK")
</pallas_src>

<mosaic_0001>
module attributes {stable_mosaic.version = 11 : i64} {
  func.func @_policy_kernel(%arg0: i32, %arg1: memref<8x32xf32, #tpu.memory_space<vmem>>, %arg2: memref<32x128xbf16, #tpu.memory_space<vmem>>, %arg3: memref<1x128xf32, #tpu.memory_space<vmem>>, %arg4: memref<128x128xbf16, #tpu.memory_space<vmem>>, %arg5: memref<1x128xf32, #tpu.memory_space<vmem>>, %arg6: memref<128x256xbf16, #tpu.memory_space<vmem>>, %arg7: memref<1x256xf32, #tpu.memory_space<vmem>>, %arg8: memref<8x256xf32, #tpu.memory_space<vmem>>) attributes {dimension_semantics = [#tpu.dimension_semantics<parallel>], iteration_bounds = array<i64: 1>, scalar_prefetch = 0 : i64, scratch_operands = 0 : i64, tpu.core_type = #tpu.core_type<tc>, window_params = [{transform_indices = @transform_0, window_bounds = array<i64: 8, 32>}, {pipeline_mode = #tpu.pipeline_mode<synchronous>, transform_indices = @transform_1, window_bounds = array<i64: 32, 128>}, {pipeline_mode = #tpu.pipeline_mode<synchronous>, transform_indices = @transform_2, window_bounds = array<i64: 1, 128>}, {pipeline_mode = #tpu.pipeline_mode<synchronous>, transform_indices = @transform_3, window_bounds = array<i64: 128, 128>}, {pipeline_mode = #tpu.pipeline_mode<synchronous>, transform_indices = @transform_4, window_bounds = array<i64: 1, 128>}, {pipeline_mode = #tpu.pipeline_mode<synchronous>, transform_indices = @transform_5, window_bounds = array<i64: 128, 256>}, {pipeline_mode = #tpu.pipeline_mode<synchronous>, transform_indices = @transform_6, window_bounds = array<i64: 1, 256>}, {transform_indices = @transform_7, window_bounds = array<i64: 8, 256>}]} {
    %c0 = arith.constant 0 : index
    %c0_0 = arith.constant 0 : index
    %0 = vector.load %arg1[%c0, %c0_0] : memref<8x32xf32, #tpu.memory_space<vmem>>, vector<8x32xf32>
    %1 = arith.truncf %0 : vector<8x32xf32> to vector<8x32xbf16>
    %c0_1 = arith.constant 0 : index
    %c0_2 = arith.constant 0 : index
    %2 = vector.load %arg2[%c0_1, %c0_2] : memref<32x128xbf16, #tpu.memory_space<vmem>>, vector<32x128xbf16>
    %cst = arith.constant dense<0.000000e+00> : vector<8x128xf32>
    %3 = tpu.matmul %1, %2, %cst {dimension_numbers = #tpu.dot_dimension_numbers<[1], [0], [0], [1], [0, 0, 1, 1], [], []>} : vector<8x32xbf16>, vector<32x128xbf16>, vector<8x128xf32> -> vector<8x128xf32>
    %c0_3 = arith.constant 0 : index
    %c0_4 = arith.constant 0 : index
    %4 = vector.load %arg3[%c0_3, %c0_4] : memref<1x128xf32, #tpu.memory_space<vmem>>, vector<1x128xf32>
    %5 = vector.broadcast %4 : vector<1x128xf32> to vector<8x128xf32>
    %6 = arith.addf %3, %5 : vector<8x128xf32>
    %cst_5 = arith.constant 0.000000e+00 : f32
    %7 = vector.broadcast %cst_5 : f32 to vector<8x128xf32>
    %8 = arith.maximumf %6, %7 : vector<8x128xf32>
    %9 = arith.truncf %8 : vector<8x128xf32> to vector<8x128xbf16>
    %c0_6 = arith.constant 0 : index
    %c0_7 = arith.constant 0 : index
    %10 = vector.load %arg4[%c0_6, %c0_7] : memref<128x128xbf16, #tpu.memory_space<vmem>>, vector<128x128xbf16>
    %cst_8 = arith.constant dense<0.000000e+00> : vector<8x128xf32>
    %11 = tpu.matmul %9, %10, %cst_8 {dimension_numbers = #tpu.dot_dimension_numbers<[1], [0], [0], [1], [0, 0, 1, 1], [], []>} : vector<8x128xbf16>, vector<128x128xbf16>, vector<8x128xf32> -> vector<8x128xf32>
    %c0_9 = arith.constant 0 : index
    %c0_10 = arith.constant 0 : index
    %12 = vector.load %arg5[%c0_9, %c0_10] : memref<1x128xf32, #tpu.memory_space<vmem>>, vector<1x128xf32>
    %13 = vector.broadcast %12 : vector<1x128xf32> to vector<8x128xf32>
    %14 = arith.addf %11, %13 : vector<8x128xf32>
    %cst_11 = arith.constant 0.000000e+00 : f32
    %15 = vector.broadcast %cst_11 : f32 to vector<8x128xf32>
    %16 = arith.maximumf %14, %15 : vector<8x128xf32>
    %17 = arith.truncf %16 : vector<8x128xf32> to vector<8x128xbf16>
    %c0_12 = arith.constant 0 : index
    %c0_13 = arith.constant 0 : index
    %18 = vector.load %arg6[%c0_12, %c0_13] : memref<128x256xbf16, #tpu.memory_space<vmem>>, vector<128x256xbf16>
    %cst_14 = arith.constant dense<0.000000e+00> : vector<8x256xf32>
    %19 = tpu.matmul %17, %18, %cst_14 {dimension_numbers = #tpu.dot_dimension_numbers<[1], [0], [0], [1], [0, 0, 1, 1], [], []>} : vector<8x128xbf16>, vector<128x256xbf16>, vector<8x256xf32> -> vector<8x256xf32>
    %c0_15 = arith.constant 0 : index
    %c0_16 = arith.constant 0 : index
    %20 = vector.load %arg7[%c0_15, %c0_16] : memref<1x256xf32, #tpu.memory_space<vmem>>, vector<1x256xf32>
    %21 = vector.broadcast %20 : vector<1x256xf32> to vector<8x256xf32>
    %22 = arith.addf %19, %21 : vector<8x256xf32>
    %23 = vector.extract_strided_slice %22 {offsets = [0, 0], sizes = [8, 128], strides = [1, 1]} : vector<8x256xf32> to vector<8x128xf32>
    %24 = vector.extract_strided_slice %22 {offsets = [0, 128], sizes = [8, 128], strides = [1, 1]} : vector<8x256xf32> to vector<8x128xf32>
    %25 = math.tanh %24 : vector<8x128xf32>
    %cst_17 = arith.constant 1.000000e+00 : f32
    %26 = vector.broadcast %cst_17 : f32 to vector<8x128xf32>
    %27 = arith.addf %25, %26 : vector<8x128xf32>
    %cst_18 = arith.constant 3.500000e+00 : f32
    %28 = vector.broadcast %cst_18 : f32 to vector<8x128xf32>
    %29 = arith.mulf %28, %27 : vector<8x128xf32>
    %cst_19 = arith.constant -5.000000e+00 : f32
    %30 = vector.broadcast %cst_19 : f32 to vector<8x128xf32>
    %31 = arith.addf %30, %29 : vector<8x128xf32>
    %32 = math.exp %31 : vector<8x128xf32>
    %c0_20 = arith.constant 0 : index
    %c0_21 = arith.constant 0 : index
    %33 = vector.load %arg8[%c0_20, %c0_21] : memref<8x256xf32, #tpu.memory_space<vmem>>, vector<8x128xf32>
    tpu.vector_store %arg8[%c0_20, %c0_21], %23 {strides = array<i32>} : memref<8x256xf32, #tpu.memory_space<vmem>>, vector<8x128xf32>,
    %c0_22 = arith.constant 0 : index
    %c128 = arith.constant 128 : index
    %34 = vector.load %arg8[%c0_22, %c128] : memref<8x256xf32, #tpu.memory_space<vmem>>, vector<8x128xf32>
    tpu.vector_store %arg8[%c0_22, %c128], %32 {strides = array<i32>} : memref<8x256xf32, #tpu.memory_space<vmem>>, vector<8x128xf32>,
    return
  }
  func.func @transform_0(%arg0: i32) -> (i32, i32) {
    %c0_i32 = arith.constant 0 : i32
    %c0_i32_0 = arith.constant 0 : i32
    return %arg0, %c0_i32 : i32, i32
  }
  func.func @transform_1(%arg0: i32) -> (i32, i32) {
    %c0_i32 = arith.constant 0 : i32
    %c0_i32_0 = arith.constant 0 : i32
    %c0_i32_1 = arith.constant 0 : i32
    return %c0_i32, %c0_i32_0 : i32, i32
  }
  func.func @transform_2(%arg0: i32) -> (i32, i32) {
    %c0_i32 = arith.constant 0 : i32
    %c0_i32_0 = arith.constant 0 : i32
    %c0_i32_1 = arith.constant 0 : i32
    return %c0_i32, %c0_i32_0 : i32, i32
  }
  func.func @transform_3(%arg0: i32) -> (i32, i32) {
    %c0_i32 = arith.constant 0 : i32
    %c0_i32_0 = arith.constant 0 : i32
    %c0_i32_1 = arith.constant 0 : i32
    return %c0_i32, %c0_i32_0 : i32, i32
  }
  func.func @transform_4(%arg0: i32) -> (i32, i32) {
    %c0_i32 = arith.constant 0 : i32
    %c0_i32_0 = arith.constant 0 : i32
    %c0_i32_1 = arith.constant 0 : i32
    return %c0_i32, %c0_i32_0 : i32, i32
  }
  func.func @transform_5(%arg0: i32) -> (i32, i32) {
    %c0_i32 = arith.constant 0 : i32
    %c0_i32_0 = arith.constant 0 : i32
    %c0_i32_1 = arith.constant 0 : i32
    return %c0_i32, %c0_i32_0 : i32, i32
  }
  func.func @transform_6(%arg0: i32) -> (i32, i32) {
    %c0_i32 = arith.constant 0 : i32
    %c0_i32_0 = arith.constant 0 : i32
    %c0_i32_1 = arith.constant 0 : i32
    return %c0_i32, %c0_i32_0 : i32, i32
  }
  func.func @transform_7(%arg0: i32) -> (i32, i32) {
    %c0_i32 = arith.constant 0 : i32
    %c0_i32_0 = arith.constant 0 : i32
    return %arg0, %c0_i32 : i32, i32
  }
}

</mosaic_0001>

<bundles_post_ra>
// kernel: policy_forward.1
= control target key start
LH: loop header
LB: loop body
LE: loop exit
PB: predicated region body
PF: predicated region fallthrough
CT: control target
= control target key end

     0   :  { %12 = vsyncpa [#allocation3], 0  ;;  %s716_s0 = inlined_call_operand.hbm [shape: f32[8,32], index: 0, kind: input, shape index: {}]   ;;  %s717_s1 = inlined_call_operand.hbm [shape: bf16[32,128], index: 1, kind: input, shape index: {}]   ;;  %s718_s2 = inlined_call_operand.vmem [shape: f32[1,128], index: 2, kind: input, shape index: {}]   ;;  %s719_s3 = inlined_call_operand.hbm [shape: bf16[128,128], index: 3, kind: input, shape index: {}]   ;;  %s720_s4 = inlined_call_operand.hbm [shape: f32[1,128], index: 4, kind: input, shape index: {}]   ;;  %s721_s5 = inlined_call_operand.hbm [shape: bf16[128,256], index: 5, kind: input, shape index: {}]   ;;  %s722_s6 = inlined_call_operand.vmem [shape: f32[1,256], index: 6, kind: input, shape index: {}]   ;;  %s723_s7 = inlined_call_operand.vmem [shape: f32[8,256], index: 7, kind: output, shape index: {}]  }
   0x1   :  { %13 = vsyncpa [#allocation5], 0  ;;  %s30_s26 = sshll.u32 %s717_s1, 4  ;;  %s31_s26 = int_to_ptr.hbm [resolvable:$true] %s30_s26 }
   0x2   :  { %14 = vsyncpa [#allocation8], 0  ;;  %s640_s27 = smov [#allocation4]   ;;  %s59_s8 = sshll.u32 %s720_s4, 4  ;;  %s60_s8 = int_to_ptr.hbm [resolvable:$true] %s59_s8 }
   0x3   :  { %s32_s28 = sshll.u32 %s640_s27, 4  ;;  %s641_s9 = smov 64   ;;  %s33_s28 = int_to_ptr.vmem [resolvable:$true] %s32_s28 }
   0x4   :  { %s642_s10 = smov 4   ;;  %s643_s11 = smov [#allocation7]  }
   0x5   :  { %38 = dma.hbm_to_vmem [thread:$0]  %s31_s26, 256, %s33_s28, [#allocation5], %s641_s9, %s641_s9, %s642_s10  }
   0x6   :  { %s61_s12 = sshll.u32 %s643_s11, 4  ;;  %s20_s15 = sshll.u32 %s716_s0, 4  ;;  %s62_s12 = int_to_ptr.vmem [resolvable:$true] %s61_s12  ;;  %s21_s15 = int_to_ptr.hbm [resolvable:$true] %s20_s15 }
   0x7   :  { %64 = dma.hbm_to_vmem [thread:$0]  %s60_s8, 16, %s62_s12, [#allocation8]  }
   0x8   :  { %s45_s17 = sshll.u32 %s719_s3, 4  ;;  %s644_s18 = smov [#allocation2]   ;;  %s46_s17 = int_to_ptr.hbm [resolvable:$true] %s45_s17 }
   0x9   :  { %s22_s19 = sshll.u32 %s644_s18, 4  ;;  %s645_s4 = smov [#allocation6]   ;;  %s23_s19 = int_to_ptr.vmem [resolvable:$true] %s22_s19 }
   0xa   :  { %25 = dma.hbm_to_vmem [thread:$0]  %s21_s15, 128, %s23_s19, [#allocation3]  }
   0xb   :  { %s47_s20 = sshll.u32 %s645_s4, 4  ;;  %s69_s23 = sshll.u32 %s721_s5, 4  ;;  %s48_s20 = int_to_ptr.vmem [resolvable:$true] %s47_s20  ;;  %s70_s23 = int_to_ptr.hbm [resolvable:$true] %s69_s23 }
   0xc   :  { %53 = dma.hbm_to_vmem [thread:$0]  %s46_s17, 1024, %s48_s20, [#allocation5], %s641_s9, %s641_s9, %s642_s10  }
   0xd   :  { %s646_s0 = smov [#allocation9]   ;;  %s647_s25 = smov 128  }
   0xe   :  { %s71_s24 = sshll.u32 %s646_s0, 4  ;;  %s648_s26 = smov 8   ;;  %s72_s24 = int_to_ptr.vmem [resolvable:$true] %s71_s24 }
   0xf   :  { %77 = dma.hbm_to_vmem [thread:$0]  %s70_s23, 2048, %s72_s24, [#allocation8], %s647_s25, %s647_s25, %s648_s26  }
  0x10   :  { %634 = dma.done.wait [#allocation3], 128  }
  0x11   :  { %635 = vsyncadd [#allocation3], 4294967168 }
  0x12   :  { %636 = dma.done.wait [#allocation5], 1280  }
  0x13   :  { %637 = vsyncadd [#allocation5], 4294966016 }
  0x14   :  { %638 = dma.done.wait [#allocation8], 2064  }
  0x15   :  { %639 = vsyncadd [#allocation8], 4294965232  ;;  %v474_v0 = vld [vmem:[#allocation4 + $0x8] sm:$0xff]  ;;  %v473_v2 = vld [vmem:[#allocation4] sm:$0xff]  ;;  %vm123_vm0 = vcmask 261120  }
  0x16   :  { %v482_v1 = vld [vmem:[#allocation6 + $0x38] sm:$0xff]  ;;  %133 = vmatpush.bf16.msra.mxu0 %v474_v0  ;;  %v101_v3 = vld [vmem:[#allocation2] sm:$0xff]  ;;  %v481_v4 = vld [vmem:[#allocation6 + $0x30] sm:$0xff] }
  0x17   :  { %210 = vmatpush.bf16.msra.mxu1 %v482_v1  ;;  %v102_v5 = vpack.c.bf16 %v101_v3, %v101_v3  ;;  %v480_v6 = vld [vmem:[#allocation6 + $0x28] sm:$0xff]  ;;  %v479_v7 = vld [vmem:[#allocation6 + $0x20] sm:$0xff]  ;;  %v478_v8 = vld [vmem:[#allocation6 + $0x18] sm:$0xff] }
  0x18   :  { %v477_v9 = vld [vmem:[#allocation6 + $0x10] sm:$0xff]  ;;  %v476_v10 = vld [vmem:[#allocation6 + $0x8] sm:$0xff]  ;;  %v475_v11 = vld [vmem:[#allocation6] sm:$0xff] }
  0x19   :  { %v467_v12 = vld [vmem:[#allocation9 + $0x70] sm:$0xf]  ;;  %v498_v13 = vld [vmem:[#allocation9 + $0x74] sm:$0xf0]  ;;  %v497_v14 = vld [vmem:[#allocation9 + $0x74] sm:$0xf] }
  0x1a   :  { %134 = vmatpush.bf16.msra.mxu0 %v473_v2  ;;  %v468_v15 = vor.u32 %v498_v13, %v467_v12  ;;  %v469_v16 = vld [vmem:[#allocation9 + $0x78] sm:$0xf0]  ;;  %v459_v17 = vld [vmem:[#allocation9 + $0x60] sm:$0xf]  ;;  %v496_v18 = vld [vmem:[#allocation9 + $0x64] sm:$0xf0] }
  0x1b   :  { %211 = vmatpush.bf16.msra.mxu1 %v481_v4  ;;  %v472_v19 = vor.u32 %v497_v14, %v469_v16  ;;  %v495_v20 = vld [vmem:[#allocation9 + $0x64] sm:$0xf]  ;;  %v461_v21 = vld [vmem:[#allocation9 + $0x68] sm:$0xf0]  ;;  %v460_v22 = vor.u32 %v496_v18, %v459_v17  ;;  %v451_v24 = vld [vmem:[#allocation9 + $0x50] sm:$0xf] }
  0x1c   :  { %327 = vmatpush.bf16.msra.mxu2 %v468_v15  ;;  %v464_v23 = vor.u32 %v495_v20, %v461_v21  ;;  %v494_v25 = vld [vmem:[#allocation9 + $0x54] sm:$0xf0]  ;;  %v493_v26 = vld [vmem:[#allocation9 + $0x54] sm:$0xf]  ;;  %v453_v27 = vld [vmem:[#allocation9 + $0x58] sm:$0xf0] }
  0x1d   :  { %376 = vmatmul.msk.bf16.vlgmr.msra.gmra.mxu0 %vm123_vm0, %v102_v5  ;;  %340 = vmatpush.bf16.msra.mxu3 %v472_v19  ;;  %v452_v28 = vor.u32 %v494_v25, %v451_v24  ;;  %v456_v29 = vor.u32 %v493_v26, %v453_v27  ;;  %v443_v30 = vld [vmem:[#allocation9 + $0x40] sm:$0xf]  ;;  %v492_v31 = vld [vmem:[#allocation9 + $0x44] sm:$0xf0]  ;;  %v491_v32 = vld [vmem:[#allocation9 + $0x44] sm:$0xf] }
  0x1e   :  { %v445_v33 = vld [vmem:[#allocation9 + $0x48] sm:$0xf0]  ;;  %v444_v34 = vor.u32 %v492_v31, %v443_v30  ;;  %v435_v36 = vld [vmem:[#allocation9 + $0x30] sm:$0xf]  ;;  %v490_v37 = vld [vmem:[#allocation9 + $0x34] sm:$0xf0] }
  0x1f   :  { %212 = vmatpush.bf16.msra.mxu1 %v480_v6  ;;  %v448_v35 = vor.u32 %v491_v32, %v445_v33  ;;  %v489_v38 = vld [vmem:[#allocation9 + $0x34] sm:$0xf]  ;;  %v437_v39 = vld [vmem:[#allocation9 + $0x38] sm:$0xf0]  ;;  %v436_v40 = vor.u32 %v490_v37, %v435_v36  ;;  %v427_v42 = vld [vmem:[#allocation9 + $0x20] sm:$0xf] }
  0x20   :  { %328 = vmatpush.bf16.msra.mxu2 %v460_v22  ;;  %v440_v41 = vor.u32 %v489_v38, %v437_v39  ;;  %v488_v43 = vld [vmem:[#allocation9 + $0x24] sm:$0xf0]  ;;  %v487_v44 = vld [vmem:[#allocation9 + $0x24] sm:$0xf]  ;;  %v429_v45 = vld [vmem:[#allocation9 + $0x28] sm:$0xf0] }
  0x21   :  { %341 = vmatpush.bf16.msra.mxu3 %v464_v23  ;;  %v428_v46 = vor.u32 %v488_v43, %v427_v42  ;;  %v432_v47 = vor.u32 %v487_v44, %v429_v45  ;;  %v508_v48 = vld [vmem:[%s718_s2] ss:$0 sm:$0xff]  ;;  %v419_v54 = vld [vmem:[#allocation9 + $0x10] sm:$0xf]  ;;  %v486_v55 = vld [vmem:[#allocation9 + $0x14] sm:$0xf0] }
  0x22   :  { %v485_v56 = vld [vmem:[#allocation9 + $0x14] sm:$0xf]  ;;  %v420_v57 = vor.u32 %v486_v55, %v419_v54  ;;  %v421_v58 = vld [vmem:[#allocation9 + $0x18] sm:$0xf0]  ;;  %v411_v60 = vld [vmem:[#allocation9] sm:$0xf] }
  0x23   :  { %213 = vmatpush.bf16.msra.mxu1 %v479_v7  ;;  %v424_v59 = vor.u32 %v485_v56, %v421_v58  ;;  %v484_v61 = vld [vmem:[#allocation9 + $0x4] sm:$0xf0]  ;;  %v483_v62 = vld [vmem:[#allocation9 + $0x4] sm:$0xf]  ;;  %v413_v0 = vld [vmem:[#allocation9 + $0x8] sm:$0xf0] }
  0x24   :  { %329 = vmatpush.bf16.msra.mxu2 %v452_v28  ;;  %v412_v63 = vor.u32 %v484_v61, %v411_v60  ;;  %v416_v1 = vor.u32 %v483_v62, %v413_v0  ;;  %v509_v2 = vld [vmem:[#allocation7] ss:$0 sm:$0xff] }
  0x25   :  { %342 = vmatpush.bf16.msra.mxu3 %v456_v29 }
  0x27   :  { %214 = vmatpush.bf16.msra.mxu1 %v478_v8  ;;  %v241_v8 = vld [vmem:[%s722_s6] sm:$0x3] }
  0x28   :  { %330 = vmatpush.bf16.msra.mxu2 %v444_v34 }
  0x29   :  { %343 = vmatpush.bf16.msra.mxu3 %v448_v35 }
  0x2b   :  { %215 = vmatpush.bf16.msra.mxu1 %v477_v9  ;;  %v243_v9 = vperm.slane %v241_v8, 0 }
  0x2c   :  { %331 = vmatpush.bf16.msra.mxu2 %v436_v40 }
  0x2d   :  { %344 = vmatpush.bf16.msra.mxu3 %v440_v41 }
  0x2f   :  { %216 = vmatpush.bf16.msra.mxu1 %v476_v10  ;;  %v244_v10 = vperm.slane %v241_v8, 1 }
  0x30   :  { %332 = vmatpush.bf16.msra.mxu2 %v428_v46 }
  0x31   :  { %345 = vmatpush.bf16.msra.mxu3 %v432_v47 }
  0x33   :  { %217 = vmatpush.bf16.msra.mxu1 %v475_v11 }
  0x34   :  { %333 = vmatpush.bf16.msra.mxu2 %v420_v57 }
  0x35   :  { %346 = vmatpush.bf16.msra.mxu3 %v424_v59 }
  0x38   :  { %334 = vmatpush.bf16.msra.mxu2 %v412_v63 }
  0x39   :  { %347 = vmatpush.bf16.msra.mxu3 %v416_v1 }
  0x9a   :  { %v136_v49 = vpop.f32.mrf.mxu0 }
  0x9b   :  { %v137_v50 = vadd.f32 %v508_v48, %v136_v49 }
  0x9d   :  { %v140_v51 = vmax.f32 %v137_v50, 0.0 }
  0x9f   :  { %v141_v52 = vpack.c.bf16 %v140_v51, %v140_v51 }
  0xa1   :  { %218 = vmatmul.bf16.vlgmr.msra.gmra.mxu1 %v141_v52 }
  0xa2   :  { %v138_v53 = vpop.f32.mrf.mxu0 }
 0x11e   :  { %v219_v3 = vpop.f32.mrf.mxu1 }
 0x11f   :  { %v220_v4 = vadd.f32 %v509_v2, %v219_v3 }
 0x121   :  { %v223_v5 = vmax.f32 %v220_v4, 0.0 }
 0x123   :  { %v224_v6 = vpack.c.bf16 %v223_v5, %v223_v5 }
 0x125   :  { %335 = vmatmul.bf16.vlgmr.msra.gmra.mxu2 %v224_v6  ;;  %348 = vmatmul.bf16.vlgmr.msra.gmra.mxu3 %v224_v6 }
 0x126   :  { %v221_v7 = vpop.f32.mrf.mxu1 }
 0x1a8   :  { %v336_v11 = vpop.f32.mrf.mxu2  ;;  %v349_v12 = vpop.f32.mrf.mxu3 }
 0x1a9   :  { %v337_v13 = vadd.f32 %v336_v11, %v243_v9  ;;  %v350_v14 = vadd.f32 %v349_v12, %v244_v10 }
 0x1ab   :  { %359 = vst [vmem:[%s723_s7] sm:$0xff] %v337_v13  ;;  %510 = vtanh.f32 %v350_v14 }
 0x1b0   :  { %v338_v15 = vpop.f32.mrf.mxu2  ;;  %v351_v16 = vpop.f32.mrf.mxu3 }
 0x1b1   :  { %v511_v17 = vpop.eup %510 }
 0x1b2   :  { %v354_v18 = vadd.f32 1.0, %v511_v17 }
 0x1b4   :  { %v355_v19 = vmul.f32 3.5, %v354_v18 }
 0x1b6   :  { %v356_v20 = vadd.f32 -5.0, %v355_v19 }
 0x1b8   :  { %v357_v21 = vmul.f32 1.442695, %v356_v20 }
 0x1ba   :  { %512 = vpow2.f32 %v357_v21 }
 0x1c0   :  { %v513_v22 = vpop.eup %512 }
 0x1c1   :  { %360 = vst [vmem:[%s723_s7 + $0x8] sm:$0xff] %v513_v22 }
 0x1c2   :  { %365 = vsyncpa [#allocation3], 1 }
 0x1c3   :  { %366 = vsyncpa [#allocation5], 1 }
 0x1c4   :  { %367 = vsyncpa [#allocation8], 1 }

</bundles_post_ra>
